<compile_context>
chip_gen: v5e
topology: v5e:2x2
jax: 0.10.0
libtpu: 0.0.40
codegen_flags: <defaults>
</compile_context>

<pallas_src>
import functools

import jax
import jax.numpy as jnp
from jax.experimental import pallas as pl
from jax.experimental.pallas import tpu as pltpu

LANES = 128
SUBLANES = 8
BF16_ROWS = 16                   # bf16 sublane-packing granularity
H1, H2 = 100, 64                 # hidden widths from the PyTorch module
COMPUTE_DTYPE = jnp.bfloat16     # MXU input dtype (accumulation stays f32)
TILE_B_CAP = 1024                # per review: 512-1024 reaches ~85% of HBM roofline


def _round_up(n, m):
    return (n + m - 1) // m * m


def _cdiv(a, b):
    return (a + b - 1) // b


def _choose_tiling(batch):
    """Balanced batch tiling: big tiles (<=1024 rows), >=2 grid steps for megacore."""
    # Give both v7x TensorCores work once each can get >= one full bf16 tile.
    min_tiles = 2 if batch >= 2 * BF16_ROWS else 1
    n_tiles = max(_cdiv(batch, TILE_B_CAP), min_tiles)
    tile_b = _round_up(_cdiv(batch, n_tiles), BF16_ROWS)
    tile_b = min(tile_b, _round_up(batch, SUBLANES))   # don't exceed the (padded) batch
    n_tiles = _cdiv(batch, tile_b)
    return tile_b, n_tiles


def _mlp_kernel(x_ref, w_ref, b_ref, o_ref, *, i_dim_p, wcols):
    # x_ref: (tile_b, i_dim_p) bf16 (already cast in the wrapper)
    # w_ref: (i_dim_p + 2*wcols, wcols) bf16  -> [W1; W2; W3] stacked on rows,
    #        with every row offset a multiple of 16 (bf16 packed-tile aligned).
    # b_ref: (8, wcols) f32                   -> rows 0,1,2 = b1, b2, b3
    # o_ref: (tile_b, wcols) f32              -> lane-dense (wcols % 128 == 0)
    x = x_ref[...]

    # Static, 16-row-aligned views into the packed weight slab (zero-cost).
    w1 = w_ref[0:i_dim_p, :]
    w2 = w_ref[i_dim_p:i_dim_p + wcols, :]
    w3 = w_ref[i_dim_p + wcols:i_dim_p + 2 * wcols, :]
    b1 = b_ref[0:1, :]
    b2 = b_ref[1:2, :]
    b3 = b_ref[2:3, :]

    h1 = jnp.dot(x, w1, preferred_element_type=jnp.float32) + b1
    h1 = jnp.maximum(h1, 0.0).astype(COMPUTE_DTYPE)
    h2 = jnp.dot(h1, w2, preferred_element_type=jnp.float32) + b2
    h2 = jnp.maximum(h2, 0.0).astype(COMPUTE_DTYPE)
    o = jnp.dot(h2, w3, preferred_element_type=jnp.float32) + b3
    o_ref[...] = o.astype(o_ref.dtype)


def pack_mlp_params(w1, b1, w2, b2, w3, b3):
    """Zero-pad and pack the MLP params into two contiguous slabs.

    Weights are expected as [in, out]. Returns:
      w_packed : bf16 [i_dim_p + 2*wcols, wcols]   (W1, W2, W3 stacked on rows)
      b_packed : f32  [8, wcols]                   (rows 0..2 = b1, b2, b3)
      i_dim_p  : padded input feature width (multiple of 16)
      o_dim    : true output width (for slicing the padded result)
    """
    i_dim = w1.shape[0]
    o_dim = w3.shape[1]
    # 16-row alignment so W2/W3 slab offsets sit on bf16 packed-tile boundaries.
    i_dim_p = _round_up(max(i_dim, 1), BF16_ROWS)
    wcols = max(LANES, _round_up(o_dim, LANES))  # lane-dense width for all layers

    def pad2(a, rows, cols):
        return jnp.pad(a, ((0, rows - a.shape[0]), (0, cols - a.shape[1])))

    w1p = pad2(jnp.asarray(w1, jnp.float32), i_dim_p, wcols)
    w2p = pad2(jnp.asarray(w2, jnp.float32), wcols, wcols)
    w3p = pad2(jnp.asarray(w3, jnp.float32), wcols, wcols)
    w_packed = jnp.concatenate([w1p, w2p, w3p], axis=0).astype(COMPUTE_DTYPE)

    def padb(b):
        b = jnp.asarray(b, jnp.float32).reshape(1, -1)
        return jnp.pad(b, ((0, 0), (0, wcols - b.shape[1])))

    b_packed = jnp.concatenate(
        [padb(b1), padb(b2), padb(b3),
         jnp.zeros((SUBLANES - 3, wcols), jnp.float32)], axis=0)
    return w_packed, b_packed, i_dim_p, o_dim


@functools.partial(jax.jit, static_argnames=("i_dim_p", "o_dim"))
def mlp_forward(x, w_packed, b_packed, *, i_dim_p, o_dim):
    batch, i_dim = x.shape
    wcols = w_packed.shape[1]

    # Single wrapper pass: zero-pad the contraction dim (must be real zeros so
    # padded weight rows contribute 0, never NaN) and fold in the bf16 cast.
    # No batch-axis pad: the ragged last grid block is handled by Pallas
    # (OOB reads only affect output rows >= batch, whose writes are discarded).
    xp = jnp.pad(x, ((0, 0), (0, i_dim_p - i_dim))).astype(COMPUTE_DTYPE)

    tile_b, n_tiles = _choose_tiling(batch)
    kernel = functools.partial(_mlp_kernel, i_dim_p=i_dim_p, wcols=wcols)

    out_p = pl.pallas_call(
        kernel,
        out_shape=jax.ShapeDtypeStruct((batch, wcols), jnp.float32),
        grid_spec=pltpu.PrefetchScalarGridSpec(
            num_scalar_prefetch=0,
            grid=(n_tiles,),
            in_specs=[
                # x: tiled over the batch axis only.
                pl.BlockSpec((tile_b, i_dim_p), lambda i: (i, 0)),
                # Packed weights / biases: full-array blocks, constant index_map
                # => DMA'd once and kept resident across all batch tiles.
                pl.BlockSpec(w_packed.shape, lambda i: (0, 0)),
                pl.BlockSpec(b_packed.shape, lambda i: (0, 0)),
            ],
            out_specs=pl.BlockSpec((tile_b, wcols), lambda i: (i, 0)),
        ),
        compiler_params=pltpu.CompilerParams(dimension_semantics=("parallel",)),
    )(xp, w_packed, b_packed)
    # Column slice back to the true output width. Callers that can consume the
    # 128-wide padded slab directly should skip this (it is an extra HBM pass).
    return out_p[:, :o_dim]


def init_mlp_params(key, i_dim, o_dim):
    """Deterministic init mimicking nn.Linear's default U(-1/sqrt(fan_in), 1/sqrt(fan_in))."""
    dims = [(i_dim, H1), (H1, H2), (H2, o_dim)]
    params = []
    for (fan_in, fan_out) in dims:
        key, kw, kb = jax.random.split(key, 3)
        bound = 1.0 / jnp.sqrt(jnp.float32(fan_in))
        w = jax.random.uniform(kw, (fan_in, fan_out), jnp.float32, -bound, bound)
        b = jax.random.uniform(kb, (1, fan_out), jnp.float32, -bound, bound)
        params += [w, b]
    return params


def mlp_reference_f32(x, w1, b1, w2, b2, w3, b3):
    h1 = jnp.maximum(x @ w1 + b1, 0.0)
    h2 = jnp.maximum(h1 @ w2 + b2, 0.0)
    return h2 @ w3 + b3


def mlp_reference_bf16(x, w1, b1, w2, b2, w3, b3):
    # Emulates the kernel's numerics: bf16 matmul inputs, f32 accumulation/bias.
    bf = COMPUTE_DTYPE
    h1 = jnp.dot(x.astype(bf), w1.astype(bf), preferred_element_type=jnp.float32) + b1
    h1 = jnp.maximum(h1, 0.0).astype(bf)
    h2 = jnp.dot(h1, w2.astype(bf), preferred_element_type=jnp.float32) + b2
    h2 = jnp.maximum(h2, 0.0).astype(bf)
    return jnp.dot(h2, w3.astype(bf), preferred_element_type=jnp.float32) + b3


if __name__ == "__main__":
    key = jax.random.PRNGKey(0)
    key, kx = jax.random.split(key)

    batch, i_dim, o_dim = 8, 32, 16
    x = jax.random.normal(kx, (batch, i_dim), jnp.float32)
    w1, b1, w2, b2, w3, b3 = init_mlp_params(key, i_dim, o_dim)

    w_packed, b_packed, i_dim_p, o_dim_real = pack_mlp_params(w1, b1, w2, b2, w3, b3)
    out = mlp_forward(x, w_packed, b_packed, i_dim_p=i_dim_p, o_dim=o_dim_real)
    out = jax.block_until_ready(out)

    assert out.shape == (batch, o_dim)
    ref_bf16 = mlp_reference_bf16(x, w1, b1, w2, b2, w3, b3)
    ref_f32 = mlp_reference_f32(x, w1, b1, w2, b2, w3, b3)
    # Same-math (bf16 inputs, f32 accum) reference: should match tightly.
    assert jnp.allclose(out, ref_bf16, atol=1e-2, rtol=1e-2), "mismatch vs bf16 reference"
    # Full-precision reference: loose tolerance accounts for bf16 operand rounding.
    assert jnp.allclose(out, ref_f32, atol=1e-1, rtol=1e-1), "mismatch vs f32 reference"

    # Exercise a ragged / multi-tile batch path too (>=2 grid steps, non-divisible).
    batch2 = 40
    key, kx2 = jax.random.split(key)
    x2 = jax.random.normal(kx2, (batch2, i_dim), jnp.float32)
    out2 = jax.block_until_ready(
        mlp_forward(x2, w_packed, b_packed, i_dim_p=i_dim_p, o_dim=o_dim_real))
    assert out2.shape == (batch2, o_dim)
    assert jnp.allclose(out2, mlp_reference_bf16(x2, w1, b1, w2, b2, w3, b3),
                        atol=1e-2, rtol=1e-2), "mismatch vs bf16 reference (ragged batch)"

    print("KERNEL_OK")
</pallas_src>

<mosaic_0001>
module attributes {stable_mosaic.version = 11 : i64} {
  func.func @_mlp_kernel(%arg0: i32, %arg1: memref<8x32xbf16, #tpu.memory_space<vmem>>, %arg2: memref<288x128xbf16, #tpu.memory_space<vmem>>, %arg3: memref<8x128xf32, #tpu.memory_space<vmem>>, %arg4: memref<8x128xf32, #tpu.memory_space<vmem>>) attributes {dimension_semantics = [#tpu.dimension_semantics<parallel>], iteration_bounds = array<i64: 1>, scalar_prefetch = 0 : i64, scratch_operands = 0 : i64, tpu.core_type = #tpu.core_type<tc>, window_params = [{transform_indices = @transform_0, window_bounds = array<i64: 8, 32>}, {pipeline_mode = #tpu.pipeline_mode<synchronous>, transform_indices = @transform_1, window_bounds = array<i64: 288, 128>}, {pipeline_mode = #tpu.pipeline_mode<synchronous>, transform_indices = @transform_2, window_bounds = array<i64: 8, 128>}, {transform_indices = @transform_3, window_bounds = array<i64: 8, 128>}]} {
    %c0 = arith.constant 0 : index
    %c0_0 = arith.constant 0 : index
    %0 = vector.load %arg1[%c0, %c0_0] : memref<8x32xbf16, #tpu.memory_space<vmem>>, vector<8x32xbf16>
    %c0_1 = arith.constant 0 : index
    %c0_2 = arith.constant 0 : index
    %1 = vector.load %arg2[%c0_1, %c0_2] : memref<288x128xbf16, #tpu.memory_space<vmem>>, vector<32x128xbf16>
    %c32 = arith.constant 32 : index
    %c0_3 = arith.constant 0 : index
    %2 = vector.load %arg2[%c32, %c0_3] : memref<288x128xbf16, #tpu.memory_space<vmem>>, vector<128x128xbf16>
    %c160 = arith.constant 160 : index
    %c0_4 = arith.constant 0 : index
    %3 = vector.load %arg2[%c160, %c0_4] : memref<288x128xbf16, #tpu.memory_space<vmem>>, vector<128x128xbf16>
    %c0_5 = arith.constant 0 : index
    %c0_6 = arith.constant 0 : index
    %4 = vector.load %arg3[%c0_5, %c0_6] : memref<8x128xf32, #tpu.memory_space<vmem>>, vector<1x128xf32>
    %c1 = arith.constant 1 : index
    %c0_7 = arith.constant 0 : index
    %5 = vector.load %arg3[%c1, %c0_7] : memref<8x128xf32, #tpu.memory_space<vmem>>, vector<1x128xf32>
    %c2 = arith.constant 2 : index
    %c0_8 = arith.constant 0 : index
    %6 = vector.load %arg3[%c2, %c0_8] : memref<8x128xf32, #tpu.memory_space<vmem>>, vector<1x128xf32>
    %cst = arith.constant dense<0.000000e+00> : vector<8x128xf32>
    %7 = tpu.matmul %0, %1, %cst {dimension_numbers = #tpu.dot_dimension_numbers<[1], [0], [0], [1], [0, 0, 1, 1], [], []>} : vector<8x32xbf16>, vector<32x128xbf16>, vector<8x128xf32> -> vector<8x128xf32>
    %8 = vector.broadcast %4 : vector<1x128xf32> to vector<8x128xf32>
    %9 = arith.addf %7, %8 : vector<8x128xf32>
    %cst_9 = arith.constant 0.000000e+00 : f32
    %10 = vector.broadcast %cst_9 : f32 to vector<8x128xf32>
    %11 = arith.maximumf %9, %10 : vector<8x128xf32>
    %12 = arith.truncf %11 : vector<8x128xf32> to vector<8x128xbf16>
    %cst_10 = arith.constant dense<0.000000e+00> : vector<8x128xf32>
    %13 = tpu.matmul %12, %2, %cst_10 {dimension_numbers = #tpu.dot_dimension_numbers<[1], [0], [0], [1], [0, 0, 1, 1], [], []>} : vector<8x128xbf16>, vector<128x128xbf16>, vector<8x128xf32> -> vector<8x128xf32>
    %14 = vector.broadcast %5 : vector<1x128xf32> to vector<8x128xf32>
    %15 = arith.addf %13, %14 : vector<8x128xf32>
    %cst_11 = arith.constant 0.000000e+00 : f32
    %16 = vector.broadcast %cst_11 : f32 to vector<8x128xf32>
    %17 = arith.maximumf %15, %16 : vector<8x128xf32>
    %18 = arith.truncf %17 : vector<8x128xf32> to vector<8x128xbf16>
    %cst_12 = arith.constant dense<0.000000e+00> : vector<8x128xf32>
    %19 = tpu.matmul %18, %3, %cst_12 {dimension_numbers = #tpu.dot_dimension_numbers<[1], [0], [0], [1], [0, 0, 1, 1], [], []>} : vector<8x128xbf16>, vector<128x128xbf16>, vector<8x128xf32> -> vector<8x128xf32>
    %20 = vector.broadcast %6 : vector<1x128xf32> to vector<8x128xf32>
    %21 = arith.addf %19, %20 : vector<8x128xf32>
    %c0_13 = arith.constant 0 : index
    %c0_14 = arith.constant 0 : index
    %22 = vector.load %arg4[%c0_13, %c0_14] : memref<8x128xf32, #tpu.memory_space<vmem>>, vector<8x128xf32>
    tpu.vector_store %arg4[%c0_13, %c0_14], %21 {strides = array<i32>} : memref<8x128xf32, #tpu.memory_space<vmem>>, vector<8x128xf32>,
    return
  }
  func.func @transform_0(%arg0: i32) -> (i32, i32) {
    %c0_i32 = arith.constant 0 : i32
    %c0_i32_0 = arith.constant 0 : i32
    return %arg0, %c0_i32 : i32, i32
  }
  func.func @transform_1(%arg0: i32) -> (i32, i32) {
    %c0_i32 = arith.constant 0 : i32
    %c0_i32_0 = arith.constant 0 : i32
    %c0_i32_1 = arith.constant 0 : i32
    return %c0_i32, %c0_i32_0 : i32, i32
  }
  func.func @transform_2(%arg0: i32) -> (i32, i32) {
    %c0_i32 = arith.constant 0 : i32
    %c0_i32_0 = arith.constant 0 : i32
    %c0_i32_1 = arith.constant 0 : i32
    return %c0_i32, %c0_i32_0 : i32, i32
  }
  func.func @transform_3(%arg0: i32) -> (i32, i32) {
    %c0_i32 = arith.constant 0 : i32
    %c0_i32_0 = arith.constant 0 : i32
    return %arg0, %c0_i32 : i32, i32
  }
}

</mosaic_0001>

<bundles_post_ra>
// kernel: mlp_forward.1
= control target key start
LH: loop header
LB: loop body
LE: loop exit
PB: predicated region body
PF: predicated region fallthrough
CT: control target
= control target key end

     0   :  { %8 = vsyncpa [#allocation3], 0  ;;  %s440_s0 = inlined_call_operand.vmem [shape: bf16[8,32], index: 0, kind: input, shape index: {}]   ;;  %s441_s1 = inlined_call_operand.hbm [shape: bf16[288,128], index: 1, kind: input, shape index: {}]   ;;  %s442_s2 = inlined_call_operand.vmem [shape: f32[8,128], index: 2, kind: input, shape index: {}]   ;;  %s443_s3 = inlined_call_operand.hbm [shape: f32[8,128], index: 3, kind: output, shape index: {}]  }
   0x1   :  { %9 = vsyncpa [#allocation4], 0  ;;  %s16_s14 = sshll.u32 %s441_s1, 4  ;;  %s398_s15 = smov [#allocation2]   ;;  %s17_s14 = int_to_ptr.hbm [resolvable:$true] %s16_s14 }
   0x2   :  { %s18_s16 = sshll.u32 %s398_s15, 4  ;;  %s399_s17 = smov 64   ;;  %s19_s16 = int_to_ptr.vmem [resolvable:$true] %s18_s16 }
   0x3   :  { %s400_s18 = smov 4  }
   0x4   :  { %24 = dma.hbm_to_vmem [thread:$0]  %s17_s14, 2304, %s19_s16, [#allocation3], %s399_s17, %s399_s17, %s400_s18  }
   0x5   :  { %394 = dma.done.wait [#allocation3], 2304  }
   0x6   :  { %395 = vsyncadd [#allocation3], 4294964992  ;;  %v322_v0 = vld [vmem:[#allocation2 + $0x8] sm:$0xff]  ;;  %v321_v2 = vld [vmem:[#allocation2] sm:$0xff]  ;;  %vm85_vm0 = vcmask 261120   ;;  %s401_s25 = smov [#allocation5]  }
   0x7   :  { %v330_v1 = vld [vmem:[#allocation2 + $0x48] sm:$0xff]  ;;  %95 = vmatpush.bf16.msra.mxu0 %v322_v0  ;;  %v329_v3 = vld [vmem:[#allocation2 + $0x40] sm:$0xff]  ;;  %v328_v5 = vld [vmem:[#allocation2 + $0x38] sm:$0xff]  ;;  %s236_s26 = sshll.u32 %s401_s25, 4  ;;  %s238_s29 = sshll.u32 %s443_s3, 4  ;;  %s237_s26 = int_to_ptr.vmem [resolvable:$true] %s236_s26  ;;  %s239_s29 = int_to_ptr.hbm [resolvable:$true] %s238_s29 }
   0x8   :  { %153 = vmatpush.bf16.msra.mxu1 %v330_v1  ;;  %v32_v4 = vld [vmem:[%s440_s0] sm:$0xf]  ;;  %v327_v6 = vld [vmem:[#allocation2 + $0x30] sm:$0xff]  ;;  %v326_v7 = vld [vmem:[#allocation2 + $0x28] sm:$0xff] }
   0x9   :  { %v325_v8 = vld [vmem:[#allocation2 + $0x20] sm:$0xff]  ;;  %v324_v9 = vld [vmem:[#allocation2 + $0x18] sm:$0xff]  ;;  %v323_v10 = vld [vmem:[#allocation2 + $0x10] sm:$0xff] }
   0xa   :  { %v338_v11 = vld [vmem:[#allocation2 + $0x88] sm:$0xff]  ;;  %v337_v12 = vld [vmem:[#allocation2 + $0x80] sm:$0xff]  ;;  %v336_v13 = vld [vmem:[#allocation2 + $0x78] sm:$0xff] }
   0xb   :  { %96 = vmatpush.bf16.msra.mxu0 %v321_v2  ;;  %217 = vmatpush.bf16.msra.mxu2 %v338_v11  ;;  %v335_v14 = vld [vmem:[#allocation2 + $0x70] sm:$0xff]  ;;  %v334_v15 = vld [vmem:[#allocation2 + $0x68] sm:$0xff]  ;;  %v333_v16 = vld [vmem:[#allocation2 + $0x60] sm:$0xff] }
   0xc   :  { %154 = vmatpush.bf16.msra.mxu1 %v329_v3  ;;  %v343_v17 = vld [vmem:[%s442_s2] ss:$0 sm:$0xff]  ;;  %v332_v23 = vld [vmem:[#allocation2 + $0x58] sm:$0xff]  ;;  %v331_v24 = vld [vmem:[#allocation2 + $0x50] sm:$0xff] }
   0xd   :  { %v344_v25 = vld [vmem:[%s442_s2 + $0x1] ss:$0 sm:$0xff]  ;;  %v345_v31 = vld [vmem:[%s442_s2 + $0x2] ss:$0 sm:$0xff] }
   0xe   :  { %256 = vmatmul.msk.bf16.vlgmr.msra.gmra.mxu0 %vm85_vm0, %v32_v4 }
   0xf   :  { %218 = vmatpush.bf16.msra.mxu2 %v337_v12 }
  0x10   :  { %155 = vmatpush.bf16.msra.mxu1 %v328_v5 }
  0x13   :  { %219 = vmatpush.bf16.msra.mxu2 %v336_v13 }
  0x14   :  { %156 = vmatpush.bf16.msra.mxu1 %v327_v6 }
  0x17   :  { %220 = vmatpush.bf16.msra.mxu2 %v335_v14 }
  0x18   :  { %157 = vmatpush.bf16.msra.mxu1 %v326_v7 }
  0x1b   :  { %221 = vmatpush.bf16.msra.mxu2 %v334_v15 }
  0x1c   :  { %158 = vmatpush.bf16.msra.mxu1 %v325_v8 }
  0x1f   :  { %222 = vmatpush.bf16.msra.mxu2 %v333_v16 }
  0x20   :  { %159 = vmatpush.bf16.msra.mxu1 %v324_v9 }
  0x23   :  { %223 = vmatpush.bf16.msra.mxu2 %v332_v23 }
  0x24   :  { %160 = vmatpush.bf16.msra.mxu1 %v323_v10 }
  0x27   :  { %224 = vmatpush.bf16.msra.mxu2 %v331_v24 }
  0x8b   :  { %v98_v18 = vpop.f32.mrf.mxu0 }
  0x8c   :  { %v99_v19 = vadd.f32 %v343_v17, %v98_v18 }
  0x8e   :  { %v102_v20 = vmax.f32 %v99_v19, 0.0 }
  0x90   :  { %v103_v21 = vpack.c.bf16 %v102_v20, %v102_v20 }
  0x92   :  { %161 = vmatmul.bf16.vlgmr.msra.gmra.mxu1 %v103_v21 }
  0x93   :  { %v100_v22 = vpop.f32.mrf.mxu0 }
 0x10f   :  { %v162_v26 = vpop.f32.mrf.mxu1 }
 0x110   :  { %v163_v27 = vadd.f32 %v344_v25, %v162_v26 }
 0x112   :  { %v166_v28 = vmax.f32 %v163_v27, 0.0 }
 0x114   :  { %v167_v29 = vpack.c.bf16 %v166_v28, %v166_v28 }
 0x116   :  { %225 = vmatmul.bf16.vlgmr.msra.gmra.mxu2 %v167_v29 }
 0x117   :  { %v164_v30 = vpop.f32.mrf.mxu1 }
 0x199   :  { %v226_v32 = vpop.f32.mrf.mxu2 }
 0x19a   :  { %v227_v33 = vadd.f32 %v345_v31, %v226_v32 }
 0x19c   :  { %230 = vst [vmem:[#allocation5] sm:$0xff] %v227_v33 }
 0x19d   :  { %241 = dma.vmem_to_hbm [thread:$0]  %s237_s26, 128, %s239_s29, [#allocation4]  }
 0x1a1   :  { %v228_v34 = vpop.f32.mrf.mxu2 }
 0x1a2   :  { %396 = dma.done.wait [#allocation4], 128  }
 0x1a3   :  { %397 = vsyncadd [#allocation4], 4294967168 }
 0x1a4   :  { %246 = vsyncpa [#allocation3], 1 }
 0x1a5   :  { %247 = vsyncpa [#allocation4], 1 }

</bundles_post_ra>
